<compile_context>
chip_gen: v6e
topology: v6e:2x2x1
jax: 0.10.0
libtpu: 0.0.40
codegen_flags: <defaults>
</compile_context>

<pallas_src>
import math
import jax
import jax.numpy as jnp
from jax import lax
from jax.experimental import pallas as pl
from jax.experimental.pallas import tpu as pltpu


def _interp_matrix(in_size: int, scale_factor, mode: str) -> jnp.ndarray:
    """Row-interpolation matrix M (out_size, in_size) s.t. up = M @ x."""
    out_size = int(math.floor(in_size * scale_factor))
    m = jnp.zeros((out_size, in_size), jnp.float32)
    rows = jnp.arange(out_size)
    if mode == "nearest":
        idx = jnp.floor(jnp.arange(out_size, dtype=jnp.float32)
                        * (in_size / out_size)).astype(jnp.int32)
        idx = jnp.clip(idx, 0, in_size - 1)
        m = m.at[rows, idx].set(1.0)
    else:  # bilinear with align_corners=True (matches the PyTorch module)
        if out_size == 1:
            src = jnp.zeros((1,), jnp.float32)
        else:
            src = jnp.arange(out_size, dtype=jnp.float32) * (
                (in_size - 1) / (out_size - 1))
        lo = jnp.clip(jnp.floor(src).astype(jnp.int32), 0, in_size - 1)
        hi = jnp.clip(lo + 1, 0, in_size - 1)
        frac = src - lo.astype(jnp.float32)
        m = m.at[rows, lo].add(1.0 - frac)
        m = m.at[rows, hi].add(frac)
    return m


def _pad_rows(m: jnp.ndarray, pad: int) -> jnp.ndarray:
    """Bake the conv zero-padding into the interpolation matrix as zero rows."""
    if pad == 0:
        return m
    z = jnp.zeros((pad, m.shape[1]), m.dtype)
    return jnp.concatenate([z, m, z], axis=0)


def deconv_swap(x_nchw, weight, bias, *, padding=0, scale_factor=1,
                mode="bilinear", compute_dtype=jnp.float32):
    N, Cin, Hi, Wi = x_nchw.shape
    Cout, Cin_w, K, K2 = weight.shape
    assert Cin_w == Cin and K == K2

    Mh = _pad_rows(_interp_matrix(Hi, scale_factor, mode), padding)   # (Hp, Hi)
    Mw = _pad_rows(_interp_matrix(Wi, scale_factor, mode), padding)   # (Wp, Wi)
    Hp, Wp = int(Mh.shape[0]), int(Mw.shape[0])
    Ho, Wo = Hp - K + 1, Wp - K + 1
    assert Ho > 0 and Wo > 0
    NHo = N * Ho

    # ---- wrapper-side operand prep (pure layout + tiny einsums, free-ish) ---
    # Input as (N*Hi, Cin*Wi): rows (n, h), cols (ci, w) -> lane-dense operand.
    x_mat = jnp.transpose(x_nchw, (0, 2, 1, 3)).reshape(N * Hi, Cin * Wi)
    x_mat = x_mat.astype(compute_dtype)

    # K row-shifted H-interp matrices (conv padding baked in), block-diag over n.
    mh_stack = jnp.stack([Mh[kh:kh + Ho] for kh in range(K)], axis=0)   # (K,Ho,Hi)
    mh_bd = jnp.einsum("kih,nm->knimh", mh_stack, jnp.eye(N, dtype=jnp.float32))
    mh_bd = mh_bd.reshape(K * N * Ho, N * Hi).astype(compute_dtype)     # (K*N*Ho, N*Hi)

    # Fold conv weights + W-interp + W taps into G[kh] : (Cin*Wi, Cout*Wo).
    mw_stack = jnp.stack([Mw[kw:kw + Wo] for kw in range(K)], axis=0)   # (K,Wo,Wi)
    g = jnp.einsum("ockq,qjw->kcwoj", weight.astype(jnp.float32), mw_stack)
    g = g.reshape(K, Cin * Wi, Cout * Wo).astype(compute_dtype)

    # Bias broadcast along the (co, j) lane layout; kept f32 (elementwise path).
    b_row = jnp.repeat(bias.astype(jnp.float32), Wo).reshape(1, Cout * Wo)

    def kernel(x_ref, mh_ref, g_ref, b_ref, o_ref):
        # One matmul: all H-upsampled + H-shifted patch rows for the batch.
        u = jnp.dot(mh_ref[...], x_ref[...],
                    preferred_element_type=jnp.float32)         # (K*N*Ho, Cin*Wi)
        u = u.astype(x_ref.dtype)  # keep MXU operands in compute_dtype
        # K matmuls accumulate the conv; row slices are sublane-aligned (NHo).
        acc = jnp.dot(u[0:NHo, :], g_ref[0],
                      preferred_element_type=jnp.float32)       # (N*Ho, Cout*Wo)
        for kh in range(1, K):
            acc = acc + jnp.dot(u[kh * NHo:(kh + 1) * NHo, :], g_ref[kh],
                                preferred_element_type=jnp.float32)
        o_ref[...] = acc + b_ref[...]                            # lane-dense store

    itemsize = jnp.dtype(compute_dtype).itemsize
    flops = (2 * (K * N * Ho) * (N * Hi) * (Cin * Wi)
             + K * 2 * (N * Ho) * (Cin * Wi) * (Cout * Wo))
    bytes_accessed = ((x_mat.size + mh_bd.size + g.size) * itemsize
                      + (b_row.size + N * Ho * Cout * Wo) * 4)

    out2d = pl.pallas_call(
        kernel,
        out_shape=jax.ShapeDtypeStruct((N * Ho, Cout * Wo), jnp.float32),
        grid_spec=pltpu.PrefetchScalarGridSpec(
            num_scalar_prefetch=0,
            grid=(1,),  # whole batch in one step: grid overhead paid once
            in_specs=[
                pl.BlockSpec((N * Hi, Cin * Wi), lambda i: (0, 0)),
                pl.BlockSpec((K * N * Ho, N * Hi), lambda i: (0, 0)),
                pl.BlockSpec((K, Cin * Wi, Cout * Wo), lambda i: (0, 0, 0)),
                pl.BlockSpec((1, Cout * Wo), lambda i: (0, 0)),
            ],
            out_specs=pl.BlockSpec((N * Ho, Cout * Wo), lambda i: (0, 0)),
        ),
        compiler_params=pltpu.CompilerParams(
            dimension_semantics=("arbitrary",)),
        cost_estimate=pl.CostEstimate(
            flops=flops, transcendentals=0, bytes_accessed=bytes_accessed),
    )(x_mat, mh_bd, g, b_row)

    # (N*Ho, Cout*Wo) -> NCHW; pure layout, done by XLA outside the kernel.
    # (For much larger N / spatial sizes, tile the (n, i) rows over a leading
    #  "parallel" grid axis so v7x's two TensorCores both get work.)
    return jnp.transpose(out2d.reshape(N, Ho, Cout, Wo), (0, 2, 1, 3))


def deconv_swap_ref(x_nchw, weight, bias, *, padding, scale_factor, mode):
    """Pure-JAX reference (same math path, XLA conv) for correctness check."""
    _, _, Hi, Wi = x_nchw.shape
    Mh = _pad_rows(_interp_matrix(Hi, scale_factor, mode), padding)
    Mw = _pad_rows(_interp_matrix(Wi, scale_factor, mode), padding)
    up = jnp.einsum("ph,nchw->ncpw", Mh, x_nchw.astype(jnp.float32))
    up = jnp.einsum("qw,ncpw->ncpq", Mw, up)
    y = lax.conv_general_dilated(
        up, weight.astype(jnp.float32), (1, 1), "VALID",
        dimension_numbers=("NCHW", "OIHW", "NCHW"))
    return y + bias.astype(jnp.float32)[None, :, None, None]


if __name__ == "__main__":
    key = jax.random.PRNGKey(0)
    k1, k2, k3 = jax.random.split(key, 3)

    # deconvSWAP(4, 8, kernel_size=3, padding=1, scale_factor=2, 'bilinear')
    # applied to x: (2, 4, 16, 16).
    N, Cin, Cout, H, W, K = 2, 4, 8, 16, 16, 3
    padding, scale_factor, mode = 1, 2, "bilinear"

    x = jax.random.normal(k1, (N, Cin, H, W), jnp.float32)
    fan_in = Cin * K * K
    bound = 1.0 / math.sqrt(fan_in)
    weight = jax.random.uniform(k2, (Cout, Cin, K, K), jnp.float32,
                                minval=-bound, maxval=bound)
    bias = jax.random.uniform(k3, (Cout,), jnp.float32,
                              minval=-bound, maxval=bound)

    y_ref = deconv_swap_ref(x, weight, bias, padding=padding,
                            scale_factor=scale_factor, mode=mode)

    # f32 path (default) — strict check.
    y = deconv_swap(x, weight, bias, padding=padding,
                    scale_factor=scale_factor, mode=mode)
    y = jax.block_until_ready(y)
    err = float(jnp.max(jnp.abs(y - y_ref)))
    assert y.shape == (N, Cout, H * scale_factor, W * scale_factor), y.shape
    assert err < 5e-4, f"f32 mismatch vs reference, max abs err = {err}"

    # bf16 matmul operands, f32 accumulation — the v6e/v7x MXU fast path.
    y_bf = deconv_swap(x, weight, bias, padding=padding,
                       scale_factor=scale_factor, mode=mode,
                       compute_dtype=jnp.bfloat16)
    y_bf = jax.block_until_ready(y_bf)
    err_bf = float(jnp.max(jnp.abs(y_bf - y_ref)))
    assert err_bf < 1e-1, f"bf16 mismatch vs reference, max abs err = {err_bf}"

    print("KERNEL_OK")
</pallas_src>

<mosaic_0001>
module attributes {stable_mosaic.version = 11 : i64} {
  func.func @kernel(%arg0: i32, %arg1: memref<32x64xf32, #tpu.memory_space<vmem>>, %arg2: memref<192x32xf32, #tpu.memory_space<vmem>>, %arg3: memref<3x64x256xf32, #tpu.memory_space<vmem>>, %arg4: memref<1x256xf32, #tpu.memory_space<vmem>>, %arg5: memref<64x256xf32, #tpu.memory_space<vmem>>) attributes {dimension_semantics = [#tpu.dimension_semantics<arbitrary>], iteration_bounds = array<i64: 1>, scalar_prefetch = 0 : i64, scratch_operands = 0 : i64, tpu.core_type = #tpu.core_type<tc>, window_params = [{pipeline_mode = #tpu.pipeline_mode<synchronous>, transform_indices = @transform_0, window_bounds = array<i64: 32, 64>}, {pipeline_mode = #tpu.pipeline_mode<synchronous>, transform_indices = @transform_1, window_bounds = array<i64: 192, 32>}, {pipeline_mode = #tpu.pipeline_mode<synchronous>, transform_indices = @transform_2, window_bounds = array<i64: 3, 64, 256>}, {pipeline_mode = #tpu.pipeline_mode<synchronous>, transform_indices = @transform_3, window_bounds = array<i64: 1, 256>}, {pipeline_mode = #tpu.pipeline_mode<synchronous>, transform_indices = @transform_4, window_bounds = array<i64: 64, 256>}]} {
    %c0 = arith.constant 0 : index
    %c0_0 = arith.constant 0 : index
    %0 = vector.load %arg2[%c0, %c0_0] : memref<192x32xf32, #tpu.memory_space<vmem>>, vector<192x32xf32>
    %c0_1 = arith.constant 0 : index
    %c0_2 = arith.constant 0 : index
    %1 = vector.load %arg1[%c0_1, %c0_2] : memref<32x64xf32, #tpu.memory_space<vmem>>, vector<32x64xf32>
    %cst = arith.constant dense<0.000000e+00> : vector<192x64xf32>
    %2 = tpu.matmul %0, %1, %cst {dimension_numbers = #tpu.dot_dimension_numbers<[1], [0], [0], [1], [0, 0, 1, 1], [], []>} : vector<192x32xf32>, vector<32x64xf32>, vector<192x64xf32> -> vector<192x64xf32>
    %3 = vector.extract_strided_slice %2 {offsets = [0, 0], sizes = [64, 64], strides = [1, 1]} : vector<192x64xf32> to vector<64x64xf32>
    %c0_3 = arith.constant 0 : index
    %c0_4 = arith.constant 0 : index
    %c0_5 = arith.constant 0 : index
    %4 = vector.load %arg3[%c0_3, %c0_4, %c0_5] : memref<3x64x256xf32, #tpu.memory_space<vmem>>, vector<1x64x256xf32>
    %5 = vector.shape_cast %4 : vector<1x64x256xf32> to vector<64x256xf32>
    %cst_6 = arith.constant dense<0.000000e+00> : vector<64x256xf32>
    %6 = tpu.matmul %3, %5, %cst_6 {dimension_numbers = #tpu.dot_dimension_numbers<[1], [0], [0], [1], [0, 0, 1, 1], [], []>} : vector<64x64xf32>, vector<64x256xf32>, vector<64x256xf32> -> vector<64x256xf32>
    %7 = vector.extract_strided_slice %2 {offsets = [64, 0], sizes = [64, 64], strides = [1, 1]} : vector<192x64xf32> to vector<64x64xf32>
    %c1 = arith.constant 1 : index
    %c0_7 = arith.constant 0 : index
    %c0_8 = arith.constant 0 : index
    %8 = vector.load %arg3[%c1, %c0_7, %c0_8] : memref<3x64x256xf32, #tpu.memory_space<vmem>>, vector<1x64x256xf32>
    %9 = vector.shape_cast %8 : vector<1x64x256xf32> to vector<64x256xf32>
    %cst_9 = arith.constant dense<0.000000e+00> : vector<64x256xf32>
    %10 = tpu.matmul %7, %9, %cst_9 {dimension_numbers = #tpu.dot_dimension_numbers<[1], [0], [0], [1], [0, 0, 1, 1], [], []>} : vector<64x64xf32>, vector<64x256xf32>, vector<64x256xf32> -> vector<64x256xf32>
    %11 = arith.addf %6, %10 : vector<64x256xf32>
    %12 = vector.extract_strided_slice %2 {offsets = [128, 0], sizes = [64, 64], strides = [1, 1]} : vector<192x64xf32> to vector<64x64xf32>
    %c2 = arith.constant 2 : index
    %c0_10 = arith.constant 0 : index
    %c0_11 = arith.constant 0 : index
    %13 = vector.load %arg3[%c2, %c0_10, %c0_11] : memref<3x64x256xf32, #tpu.memory_space<vmem>>, vector<1x64x256xf32>
    %14 = vector.shape_cast %13 : vector<1x64x256xf32> to vector<64x256xf32>
    %cst_12 = arith.constant dense<0.000000e+00> : vector<64x256xf32>
    %15 = tpu.matmul %12, %14, %cst_12 {dimension_numbers = #tpu.dot_dimension_numbers<[1], [0], [0], [1], [0, 0, 1, 1], [], []>} : vector<64x64xf32>, vector<64x256xf32>, vector<64x256xf32> -> vector<64x256xf32>
    %16 = arith.addf %11, %15 : vector<64x256xf32>
    %c0_13 = arith.constant 0 : index
    %c0_14 = arith.constant 0 : index
    %17 = vector.load %arg4[%c0_13, %c0_14] : memref<1x256xf32, #tpu.memory_space<vmem>>, vector<1x256xf32>
    %18 = vector.broadcast %17 : vector<1x256xf32> to vector<64x256xf32>
    %19 = arith.addf %16, %18 : vector<64x256xf32>
    %c0_15 = arith.constant 0 : index
    %c0_16 = arith.constant 0 : index
    %20 = vector.load %arg5[%c0_15, %c0_16] : memref<64x256xf32, #tpu.memory_space<vmem>>, vector<64x256xf32>
    tpu.vector_store %arg5[%c0_15, %c0_16], %19 {strides = array<i32>} : memref<64x256xf32, #tpu.memory_space<vmem>>, vector<64x256xf32>,
    return
  }
  func.func @transform_0(%arg0: i32) -> (i32, i32) {
    %c0_i32 = arith.constant 0 : i32
    %c0_i32_0 = arith.constant 0 : i32
    %c0_i32_1 = arith.constant 0 : i32
    return %c0_i32, %c0_i32_0 : i32, i32
  }
  func.func @transform_1(%arg0: i32) -> (i32, i32) {
    %c0_i32 = arith.constant 0 : i32
    %c0_i32_0 = arith.constant 0 : i32
    %c0_i32_1 = arith.constant 0 : i32
    return %c0_i32, %c0_i32_0 : i32, i32
  }
  func.func @transform_2(%arg0: i32) -> (i32, i32, i32) {
    %c0_i32 = arith.constant 0 : i32
    %c0_i32_0 = arith.constant 0 : i32
    %c0_i32_1 = arith.constant 0 : i32
    %c0_i32_2 = arith.constant 0 : i32
    return %c0_i32, %c0_i32_0, %c0_i32_1 : i32, i32, i32
  }
  func.func @transform_3(%arg0: i32) -> (i32, i32) {
    %c0_i32 = arith.constant 0 : i32
    %c0_i32_0 = arith.constant 0 : i32
    %c0_i32_1 = arith.constant 0 : i32
    return %c0_i32, %c0_i32_0 : i32, i32
  }
  func.func @transform_4(%arg0: i32) -> (i32, i32) {
    %c0_i32 = arith.constant 0 : i32
    %c0_i32_0 = arith.constant 0 : i32
    %c0_i32_1 = arith.constant 0 : i32
    return %c0_i32, %c0_i32_0 : i32, i32
  }
}

</mosaic_0001>

<bundles_post_ra>
// kernel: tpu_custom_call.1
= control target key start
LH: loop header
LB: loop body
LE: loop exit
PB: predicated region body
PF: predicated region fallthrough
CT: control target
= control target key end

     0   :  { %9 = vsyncpa [#allocation3], 0  ;;  %s1375_s0 = inlined_call_operand.vmem [shape: f32[32,64], index: 0, kind: input, shape index: {}]   ;;  %s1376_s1 = inlined_call_operand.vmem [shape: f32[192,32], index: 1, kind: input, shape index: {}]   ;;  %s1377_s2 = inlined_call_operand.hbm [shape: f32[3,64,256], index: 2, kind: input, shape index: {}]   ;;  %s1378_s3 = inlined_call_operand.vmem [shape: f32[1,256], index: 3, kind: input, shape index: {}]   ;;  %s1379_s4 = inlined_call_operand.hbm [shape: f32[64,256], index: 4, kind: output, shape index: {}]  }
   0x1   :  { %10 = vsyncpa [#allocation4], 0  ;;  %s1042_s15 = smov [#allocation2]  }
   0x2   :  { %s20_s16 = sshll.u32 %s1042_s15, 4  ;;  %s21_s16 = int_to_ptr.vmem [resolvable:$true] %s20_s16 }
   0x3   :  { %s1006_s17 = scalar_lea.vmem %s21_s16, 6144  ;;  %p1011_p1 = scmp.lt.s32.totalorder %s21_s16, %s21_s16 }
   0x4   :  { %p1007_p0 = scmp.ne.s32.totalorder %s21_s16, %s1006_s17  ;;  %p1012_p2 = scmp.lt.s32.totalorder %s1006_s17, %s1006_s17 }
   0x6   :  { %p1013_p3 = por %p1012_p2, %p1011_p1 }
   0x8   :  { %p1014_p4 = pnand %p1013_p3, %p1007_p0 }
   0xa   :  { %1017 = shalt.err (!%p1014_p4)
}
   0xb   :  { %s1043_s18 = smov 256   ;;  %s1044_s19 = smov 16  }
   0xc   :  { %26 = dma.hbm_to_vmem [thread:$0]  %s1377_s2, 6144, %s21_s16, [#allocation3], %s1043_s18, %s1043_s18, %s1044_s19  }
   0xd   :  { %1038 = dma.done.wait [#allocation3], 6144  }
   0xe   :  { %1039 = vsyncadd [#allocation3], 4294961152  ;;  %vm60_vm0 = vcmask 261120   ;;  %v59_v0 = vld [vmem:[%s1375_s0 + $0x18] sm:$0xff]  ;;  %v58_v1 = vld [vmem:[%s1375_s0 + $0x10] sm:$0xff]  ;;  %v1045_v49 = vmov 0.0  }
   0xf   :  { %933 = vmatprep.subr.mxu0 %v59_v0  ;;  %v32_v2 = vld [vmem:[%s1376_s1] sm:$0xff]  ;;  %v57_v3 = vld [vmem:[%s1375_s0 + $0x8] sm:$0xff]  ;;  %v34_v6 = vld [vmem:[%s1376_s1 + $0x10] sm:$0xff]  ;;  %440 = vmatprep.mubr.f32.mxu1 %v1045_v49  ;;  %vm351_vm1 = vcmask 523264  }
  0x10   :  { %934 = vmatpush3.msra.mxu0 %v59_v0  ;;  %941 = vmatprep.mubr.msk.f32.mxu0 %vm60_vm0, %v32_v2  ;;  %v56_v4 = vld [vmem:[%s1375_s0] sm:$0xff]  ;;  %v33_v5 = vld [vmem:[%s1376_s1 + $0x8] sm:$0xff]  ;;  %v35_v7 = vld [vmem:[%s1376_s1 + $0x18] sm:$0xff] }
  0x11   :  { %935 = vmatprep.subr.mxu0 %v58_v1  ;;  %v36_v8 = vld [vmem:[%s1376_s1 + $0x20] sm:$0xff]  ;;  %v37_v9 = vld [vmem:[%s1376_s1 + $0x28] sm:$0xff]  ;;  %v38_v10 = vld [vmem:[%s1376_s1 + $0x30] sm:$0xff] }
  0x12   :  { %936 = vmatpush3.msra.mxu0 %v58_v1  ;;  %v39_v11 = vld [vmem:[%s1376_s1 + $0x38] sm:$0xff]  ;;  %v40_v12 = vld [vmem:[%s1376_s1 + $0x40] sm:$0xff]  ;;  %v41_v13 = vld [vmem:[%s1376_s1 + $0x48] sm:$0xff] }
  0x13   :  { %937 = vmatprep.subr.mxu0 %v57_v3  ;;  %v42_v14 = vld [vmem:[%s1376_s1 + $0x50] sm:$0xff]  ;;  %v43_v15 = vld [vmem:[%s1376_s1 + $0x58] sm:$0xff]  ;;  %v44_v16 = vld [vmem:[%s1376_s1 + $0x60] sm:$0xff] }
  0x14   :  { %938 = vmatpush3.msra.mxu0 %v57_v3  ;;  %v45_v17 = vld [vmem:[%s1376_s1 + $0x68] sm:$0xff]  ;;  %v46_v18 = vld [vmem:[%s1376_s1 + $0x70] sm:$0xff]  ;;  %v47_v19 = vld [vmem:[%s1376_s1 + $0x78] sm:$0xff] }
  0x15   :  { %939 = vmatprep.subr.mxu0 %v56_v4  ;;  %v48_v20 = vld [vmem:[%s1376_s1 + $0x80] sm:$0xff]  ;;  %v49_v21 = vld [vmem:[%s1376_s1 + $0x88] sm:$0xff]  ;;  %v50_v22 = vld [vmem:[%s1376_s1 + $0x90] sm:$0xff] }
  0x16   :  { %940 = vmatpush3.msra.mxu0 %v56_v4  ;;  %v51_v23 = vld [vmem:[%s1376_s1 + $0x98] sm:$0xff]  ;;  %v52_v24 = vld [vmem:[%s1376_s1 + $0xa0] sm:$0xff]  ;;  %v53_v25 = vld [vmem:[%s1376_s1 + $0xa8] sm:$0xff] }
  0x17   :  { %942 = vmatmul.mubr.msk.f32.vlgmr.msra.gmra.mxu0 %vm60_vm0, %v33_v5  ;;  %v54_v26 = vld [vmem:[%s1376_s1 + $0xb0] sm:$0xff]  ;;  %v55_v27 = vld [vmem:[%s1376_s1 + $0xb8] sm:$0xff]  ;;  %v348_v30 = vld [vmem:[#allocation2 + $0xe8] sm:$0xff] }
  0x18   :  { %944 = vmatprep.mubr.msk.f32.mxu0 %vm60_vm0, %v34_v6  ;;  %v350_v28 = vld [vmem:[#allocation2 + $0xf8] sm:$0xff]  ;;  %v349_v29 = vld [vmem:[#allocation2 + $0xf0] sm:$0xff]  ;;  %v347_v31 = vld [vmem:[#allocation2 + $0xe0] sm:$0xff] }
  0x19   :  { %392 = vmatprep.subr.mxu1 %v350_v28  ;;  %v346_v32 = vld [vmem:[#allocation2 + $0xd8] sm:$0xff]  ;;  %v345_v33 = vld [vmem:[#allocation2 + $0xd0] sm:$0xff]  ;;  %v344_v34 = vld [vmem:[#allocation2 + $0xc8] sm:$0xff] }
  0x1a   :  { %393 = vmatpush1.msra.mxu1 %v349_v29  ;;  %v343_v35 = vld [vmem:[#allocation2 + $0xc0] sm:$0xff]  ;;  %v342_v36 = vld [vmem:[#allocation2 + $0xb8] sm:$0xff]  ;;  %v341_v38 = vld [vmem:[#allocation2 + $0xb0] sm:$0xff] }
  0x1b   :  { %945 = vmatmul.mubr.msk.f32.gmra.mxu0 %vm60_vm0, %v35_v7  ;;  %394 = vmatprep.subr.mxu1 %v348_v30  ;;  %v1186_v37 = vld [vmem:[#allocation2 + $0x178] sm:$0xff]  ;;  %v1189_v39 = vld [vmem:[#allocation2 + $0x170] sm:$0xff]  ;;  %v340_v40 = vld [vmem:[#allocation2 + $0xa8] sm:$0xff] }
  0x1c   :  { %947 = vmatprep.mubr.msk.f32.mxu0 %vm60_vm0, %v36_v8  ;;  %395 = vmatpush1.msra.mxu1 %v347_v31  ;;  %v339_v41 = vld [vmem:[#allocation2 + $0xa0] sm:$0xff]  ;;  %v338_v42 = vld [vmem:[#allocation2 + $0x98] sm:$0xff]  ;;  %v337_v43 = vld [vmem:[#allocation2 + $0x90] sm:$0xff] }
  0x1d   :  { %396 = vmatprep.subr.mxu1 %v346_v32  ;;  %683 = vmatprep.subr.mxu0 %v1186_v37  ;;  %v336_v44 = vld [vmem:[#allocation2 + $0x88] sm:$0xff]  ;;  %v335_v46 = vld [vmem:[#allocation2 + $0x80] sm:$0xff]  ;;  %v333_v48 = vld [vmem:[#allocation2 + $0x78] sm:$0xff] }
  0x1e   :  { %397 = vmatpush1.msra.mxu1 %v345_v33  ;;  %684 = vmatpush1.msra.mxu0 %v1189_v39  ;;  %v1192_v45 = vld [vmem:[#allocation2 + $0x168] sm:$0xff]  ;;  %v1195_v47 = vld [vmem:[#allocation2 + $0x160] sm:$0xff]  ;;  %v1200_v50 = vld [vmem:[#allocation2 + $0x158] sm:$0xff] }
  0x1f   :  { %948 = vmatmul.mubr.msk.f32.gmra.mxu0 %vm60_vm0, %v37_v9  ;;  %398 = vmatprep.subr.mxu1 %v344_v34  ;;  %v1203_v51 = vld [vmem:[#allocation2 + $0x150] sm:$0xff]  ;;  %v1206_v52 = vld [vmem:[#allocation2 + $0x148] sm:$0xff]  ;;  %v1208_v53 = vld [vmem:[#allocation2 + $0x140] sm:$0xff] }
  0x20   :  { %950 = vmatprep.mubr.msk.f32.mxu0 %vm60_vm0, %v38_v10  ;;  %399 = vmatpush1.msra.mxu1 %v343_v35  ;;  %v1212_v54 = vld [vmem:[#allocation2 + $0x138] sm:$0xff]  ;;  %v1215_v55 = vld [vmem:[#allocation2 + $0x130] sm:$0xff]  ;;  %v1218_v56 = vld [vmem:[#allocation2 + $0x128] sm:$0xff] }
  0x21   :  { %400 = vmatprep.subr.mxu1 %v342_v36  ;;  %685 = vmatprep.subr.mxu0 %v1192_v45  ;;  %v1220_v57 = vld [vmem:[#allocation2 + $0x120] sm:$0xff]  ;;  %v1224_v58 = vld [vmem:[#allocation2 + $0x118] sm:$0xff]  ;;  %v1227_v59 = vld [vmem:[#allocation2 + $0x110] sm:$0xff] }
  0x22   :  { %401 = vmatpush1.msra.mxu1 %v341_v38  ;;  %686 = vmatpush1.msra.mxu0 %v1195_v47  ;;  %v1229_v60 = vld [vmem:[#allocation2 + $0x108] sm:$0xff]  ;;  %v1232_v61 = vld [vmem:[#allocation2 + $0x100] sm:$0xff]  ;;  %v332_v7 = vld [vmem:[#allocation2 + $0x70] sm:$0xff] }
  0x23   :  { %951 = vmatmul.mubr.msk.f32.gmra.mxu0 %vm60_vm0, %v39_v11  ;;  %402 = vmatprep.subr.mxu1 %v340_v40  ;;  %v331_v9 = vld [vmem:[#allocation2 + $0x68] sm:$0xff]  ;;  %v330_v10 = vld [vmem:[#allocation2 + $0x60] sm:$0xff] }
  0x24   :  { %953 = vmatprep.mubr.msk.f32.mxu0 %vm60_vm0, %v40_v12  ;;  %403 = vmatpush1.msra.mxu1 %v339_v41  ;;  %v329_v12 = vld [vmem:[#allocation2 + $0x58] sm:$0xff]  ;;  %v318_v28 = vld [vmem:[#allocation2] sm:$0xff] }
  0x25   :  { %404 = vmatprep.subr.mxu1 %v338_v42  ;;  %687 = vmatprep.subr.mxu0 %v1200_v50 }
  0x26   :  { %405 = vmatpush1.msra.mxu1 %v337_v43  ;;  %688 = vmatpush1.msra.mxu0 %v1203_v51 }
  0x27   :  { %954 = vmatmul.mubr.msk.f32.gmra.mxu0 %vm60_vm0, %v41_v13  ;;  %406 = vmatprep.subr.mxu1 %v336_v44  ;;  %v328_v13 = vld [vmem:[#allocation2 + $0x50] sm:$0xff] }
  0x28   :  { %956 = vmatprep.mubr.msk.f32.mxu0 %vm60_vm0, %v42_v14  ;;  %407 = vmatpush1.msra.mxu1 %v335_v46 }
  0x29   :  { %529 = vmatprep.subr.mxu1 %v333_v48  ;;  %689 = vmatprep.subr.mxu0 %v1206_v52 }
  0x2a   :  { %690 = vmatpush1.msra.mxu0 %v1208_v53 }
  0x2b   :  { %957 = vmatmul.mubr.msk.f32.gmra.mxu0 %vm60_vm0, %v43_v15  ;;  %691 = vmatprep.subr.mxu0 %v1212_v54  ;;  %v327_v15 = vld [vmem:[#allocation2 + $0x48] sm:$0xff] }
  0x2c   :  { %959 = vmatprep.mubr.msk.f32.mxu0 %vm60_vm0, %v44_v16  ;;  %692 = vmatpush1.msra.mxu0 %v1215_v55  ;;  %v326_v16 = vld [vmem:[#allocation2 + $0x40] sm:$0xff] }
  0x2d   :  { %693 = vmatprep.subr.mxu0 %v1218_v56 }
  0x2e   :  { %694 = vmatpush1.msra.mxu0 %v1220_v57 }
  0x2f   :  { %960 = vmatmul.mubr.msk.f32.gmra.mxu0 %vm60_vm0, %v45_v17  ;;  %695 = vmatprep.subr.mxu0 %v1224_v58 }
  0x30   :  { %962 = vmatprep.mubr.msk.f32.mxu0 %vm60_vm0, %v46_v18  ;;  %696 = vmatpush1.msra.mxu0 %v1227_v59  ;;  %v325_v18 = vld [vmem:[#allocation2 + $0x38] sm:$0xff] }
  0x31   :  { %697 = vmatprep.subr.mxu0 %v1229_v60 }
  0x32   :  { %698 = vmatpush1.msra.mxu0 %v1232_v61 }
  0x33   :  { %963 = vmatmul.mubr.msk.f32.gmra.mxu0 %vm60_vm0, %v47_v19  ;;  %v324_v19 = vld [vmem:[#allocation2 + $0x30] sm:$0xff] }
  0x34   :  { %965 = vmatprep.mubr.msk.f32.mxu0 %vm60_vm0, %v48_v20 }
  0x37   :  { %966 = vmatmul.mubr.msk.f32.gmra.mxu0 %vm60_vm0, %v49_v21  ;;  %v323_v21 = vld [vmem:[#allocation2 + $0x28] sm:$0xff] }
  0x38   :  { %968 = vmatprep.mubr.msk.f32.mxu0 %vm60_vm0, %v50_v22  ;;  %v322_v22 = vld [vmem:[#allocation2 + $0x20] sm:$0xff] }
  0x3b   :  { %969 = vmatmul.mubr.msk.f32.gmra.mxu0 %vm60_vm0, %v51_v23 }
  0x3c   :  { %971 = vmatprep.mubr.msk.f32.mxu0 %vm60_vm0, %v52_v24  ;;  %v321_v24 = vld [vmem:[#allocation2 + $0x18] sm:$0xff] }
  0x3f   :  { %972 = vmatmul.mubr.msk.f32.gmra.mxu0 %vm60_vm0, %v53_v25  ;;  %v320_v25 = vld [vmem:[#allocation2 + $0x10] sm:$0xff] }
  0x40   :  { %974 = vmatprep.mubr.msk.f32.mxu0 %vm60_vm0, %v54_v26 }
  0x43   :  { %975 = vmatmul.mubr.msk.f32.gmra.mxu0 %vm60_vm0, %v55_v27  ;;  %v319_v27 = vld [vmem:[#allocation2 + $0x8] sm:$0xff] }
  0x44   :  { %731 = vmatprep.mubr.f32.mxu0 %v1045_v49 }
  0xd7   :  { %v1236_v62 = vpop.f32.mrf.mxu0 }
  0xd9   :  { %v1238_v63 = vpop.f32.mrf.mxu0 }
  0xdb   :  { %v1240_v0 = vpop.f32.mrf.mxu0 }
  0xdd   :  { %v1242_v1 = vpop.f32.mrf.mxu0 }
  0xdf   :  { %v1244_v2 = vpop.f32.mrf.mxu0 }
  0xe1   :  { %v1246_v3 = vpop.f32.mrf.mxu0 }
  0xe3   :  { %v1248_v4 = vpop.f32.mrf.mxu0 }
  0xe5   :  { %v1250_v5 = vpop.f32.mrf.mxu0 }
  0xe7   :  { %v955_v6 = vpop.f32.mrf.mxu0 }
  0xe9   :  { %v239_v8 = vpop.f32.mrf.mxu0 }
  0xea   :  { %881 = vmatmul.mubr.msk.f32.vlgmr.msra.gmra.mxu1 %vm351_vm1, %v239_v8 }
  0xeb   :  { %530 = vmatpush1.msra.mxu1 %v332_v7  ;;  %v958_v11 = vpop.f32.mrf.mxu0  ;;  %446 = vmatprep.mubr.f32.mxu1 %v1045_v49 }
  0xec   :  { %531 = vmatprep.subr.mxu1 %v331_v9 }
  0xed   :  { %532 = vmatpush1.msra.mxu1 %v330_v10  ;;  %v249_v14 = vpop.f32.mrf.mxu0 }
  0xee   :  { %882 = vmatmul.mubr.msk.f32.gmra.mxu1 %vm351_vm1, %v955_v6  ;;  %533 = vmatprep.subr.mxu1 %v329_v12 }
  0xef   :  { %452 = vmatprep.mubr.f32.mxu1 %v1045_v49  ;;  %534 = vmatpush1.msra.mxu1 %v328_v13  ;;  %v961_v17 = vpop.f32.mrf.mxu0 }
  0xf0   :  { %535 = vmatprep.subr.mxu1 %v327_v15 }
  0xf1   :  { %536 = vmatpush1.msra.mxu1 %v326_v16  ;;  %v259_v20 = vpop.f32.mrf.mxu0 }
  0xf2   :  { %883 = vmatmul.mubr.msk.f32.gmra.mxu1 %vm351_vm1, %v249_v14  ;;  %537 = vmatprep.subr.mxu1 %v325_v18 }
  0xf3   :  { %458 = vmatprep.mubr.f32.mxu1 %v1045_v49  ;;  %538 = vmatpush1.msra.mxu1 %v324_v19  ;;  %v964_v23 = vpop.f32.mrf.mxu0 }
  0xf4   :  { %539 = vmatprep.subr.mxu1 %v323_v21 }
  0xf5   :  { %540 = vmatpush1.msra.mxu1 %v322_v22  ;;  %v269_v26 = vpop.f32.mrf.mxu0 }
  0xf6   :  { %884 = vmatmul.mubr.msk.f32.gmra.mxu1 %vm351_vm1, %v958_v11  ;;  %541 = vmatprep.subr.mxu1 %v321_v24 }
  0xf7   :  { %464 = vmatprep.mubr.f32.mxu1 %v1045_v49  ;;  %542 = vmatpush1.msra.mxu1 %v320_v25  ;;  %v967_v29 = vpop.f32.mrf.mxu0 }
  0xf8   :  { %543 = vmatprep.subr.mxu1 %v319_v27 }
  0xf9   :  { %544 = vmatpush1.msra.mxu1 %v318_v28  ;;  %v279_v30 = vpop.f32.mrf.mxu0 }
  0xfa   :  { %885 = vmatmul.mubr.msk.f32.gmra.mxu1 %vm351_vm1, %v259_v20  ;;  %977 = vmatprep.subr.mxu1 %v1186_v37 }
  0xfb   :  { %470 = vmatprep.mubr.f32.mxu1 %v1045_v49  ;;  %897 = vmatmul.mubr.msk.f32.vlgmr.msra.gmra.mxu0 %vm351_vm1, %v279_v30  ;;  %v970_v31 = vpop.f32.mrf.mxu0 }
  0xfc   :  { %737 = vmatprep.mubr.f32.mxu0 %v1045_v49 }
  0xfd   :  { %v289_v32 = vpop.f32.mrf.mxu0 }
  0xfe   :  { %886 = vmatmul.mubr.msk.f32.gmra.mxu1 %vm351_vm1, %v961_v17 }
  0xff   :  { %476 = vmatprep.mubr.f32.mxu1 %v1045_v49  ;;  %898 = vmatmul.mubr.msk.f32.gmra.mxu0 %vm351_vm1, %v967_v29  ;;  %v973_v33 = vpop.f32.mrf.mxu0 }
 0x100   :  { %743 = vmatprep.mubr.f32.mxu0 %v1045_v49 }
 0x101   :  { %v299_v34 = vpop.f32.mrf.mxu0 }
 0x102   :  { %887 = vmatmul.mubr.msk.f32.gmra.mxu1 %vm351_vm1, %v269_v26 }
 0x103   :  { %482 = vmatprep.mubr.f32.mxu1 %v1045_v49  ;;  %899 = vmatmul.mubr.msk.f32.gmra.mxu0 %vm351_vm1, %v289_v32  ;;  %v976_v35 = vpop.f32.mrf.mxu0 }
 0x104   :  { %749 = vmatprep.mubr.f32.mxu0 %v1045_v49 }
 0x105   :  { %v309_v36 = vpop.f32.mrf.mxu0 }
 0x106   :  { %888 = vmatmul.mubr.msk.f32.gmra.mxu1 %vm351_vm1, %v964_v23 }
 0x107   :  { %577 = vmatprep.mubr.f32.mxu1 %v1045_v49  ;;  %900 = vmatmul.mubr.msk.f32.gmra.mxu0 %vm351_vm1, %v970_v31 }
 0x108   :  { %755 = vmatprep.mubr.f32.mxu0 %v1045_v49 }
 0x10a   :  { %889 = vmatmul.mubr.msk.f32.vlgmr.msra.gmra.mxu1 %vm351_vm1, %v1238_v63 }
 0x10b   :  { %985 = vmatpush1.msra.mxu1 %v1189_v39  ;;  %583 = vmatprep.mubr.f32.mxu1 %v1045_v49 }
 0x10c   :  { %978 = vmatprep.subr.mxu1 %v1192_v45  ;;  %901 = vmatmul.mubr.msk.f32.gmra.mxu0 %vm351_vm1, %v299_v34 }
 0x10d   :  { %986 = vmatpush1.msra.mxu1 %v1195_v47  ;;  %761 = vmatprep.mubr.f32.mxu0 %v1045_v49 }
 0x10e   :  { %890 = vmatmul.mubr.msk.f32.gmra.mxu1 %vm351_vm1, %v1236_v62  ;;  %979 = vmatprep.subr.mxu1 %v1200_v50  ;;  %v796_v62 = vld [vmem:[%s1378_s3] sm:$0x3]  ;;  %s1046_s3 = smov [#allocation5]  }
 0x10f   :  { %589 = vmatprep.mubr.f32.mxu1 %v1045_v49  ;;  %987 = vmatpush1.msra.mxu1 %v1203_v51  ;;  %v798_v51 = vlaneseq  ;;  %s845_s27 = sshll.u32 %s1046_s3, 4  ;;  %s846_s27 = int_to_ptr.vmem [resolvable:$true] %s845_s27 }
 0x110   :  { %980 = vmatprep.subr.mxu1 %v1206_v52  ;;  %902 = vmatmul.mubr.msk.f32.gmra.mxu0 %vm351_vm1, %v973_v33  ;;  %s1018_s28 = scalar_lea.vmem %s846_s27, 2048  ;;  %p1023_p6 = scmp.lt.s32.totalorder %s846_s27, %s846_s27 }
 0x111   :  { %988 = vmatpush1.msra.mxu1 %v1208_v53  ;;  %767 = vmatprep.mubr.f32.mxu0 %v1045_v49  ;;  %p1019_p5 = scmp.ne.s32.totalorder %s846_s27, %s1018_s28  ;;  %p1024_p7 = scmp.lt.s32.totalorder %s1018_s28, %s1018_s28 }
 0x112   :  { %891 = vmatmul.mubr.msk.f32.gmra.mxu1 %vm351_vm1, %v1242_v1  ;;  %981 = vmatprep.subr.mxu1 %v1212_v54 }
 0x113   :  { %595 = vmatprep.mubr.f32.mxu1 %v1045_v49  ;;  %989 = vmatpush1.msra.mxu1 %v1215_v55  ;;  %v799_v55 = vshrl.u32 %v798_v51, 7  ;;  %p1025_p8 = por %p1024_p7, %p1023_p6 }
 0x114   :  { %982 = vmatprep.subr.mxu1 %v1218_v56  ;;  %903 = vmatmul.mubr.msk.f32.gmra.mxu0 %vm351_vm1, %v309_v36 }
 0x115   :  { %990 = vmatpush1.msra.mxu1 %v1220_v57  ;;  %v804_v63 = vsub.s32 1, %v799_v55  ;;  %p1026_p9 = pnand %p1025_p8, %p1019_p5 }
 0x116   :  { %892 = vmatmul.mubr.msk.f32.gmra.mxu1 %vm351_vm1, %v1240_v0  ;;  %983 = vmatprep.subr.mxu1 %v1224_v58 }
 0x117   :  { %601 = vmatprep.mubr.f32.mxu1 %v1045_v49  ;;  %991 = vmatpush1.msra.mxu1 %v1227_v59  ;;  %v1343_v7 = vrot.slane %v796_v62, %v804_v63 }
 0x118   :  { %984 = vmatprep.subr.mxu1 %v1229_v60  ;;  %v800_v60 = vsub.s32 0, %v799_v55 }
 0x119   :  { %992 = vmatpush1.msra.mxu1 %v1232_v61 }
 0x11a   :  { %893 = vmatmul.mubr.msk.f32.gmra.mxu1 %vm351_vm1, %v1246_v3  ;;  %v1341_v3 = vrot.slane %v796_v62, %v800_v60 }
 0x11b   :  { %607 = vmatprep.mubr.f32.mxu1 %v1045_v49 }
 0x11e   :  { %894 = vmatmul.mubr.msk.f32.gmra.mxu1 %vm351_vm1, %v1244_v2 }
 0x11f   :  { %613 = vmatprep.mubr.f32.mxu1 %v1045_v49 }
 0x122   :  { %895 = vmatmul.mubr.msk.f32.gmra.mxu1 %vm351_vm1, %v1250_v5 }
 0x123   :  { %619 = vmatprep.mubr.f32.mxu1 %v1045_v49 }
 0x126   :  { %896 = vmatmul.mubr.msk.f32.gmra.mxu1 %vm351_vm1, %v1248_v4 }
 0x127   :  { %773 = vmatprep.mubr.f32.mxu1 %v1045_v49 }
 0x12a   :  { %904 = vmatmul.mubr.msk.f32.vlgmr.msra.gmra.mxu1 %vm351_vm1, %v976_v35 }
 0x1aa   :  { %v442_v37 = vpop.f32.mrf.mxu1 }
 0x1ac   :  { %v444_v38 = vpop.f32.mrf.mxu1 }
 0x1ae   :  { %v448_v39 = vpop.f32.mrf.mxu1 }
 0x1b0   :  { %v450_v40 = vpop.f32.mrf.mxu1 }
 0x1b2   :  { %v454_v41 = vpop.f32.mrf.mxu1 }
 0x1b4   :  { %v456_v42 = vpop.f32.mrf.mxu1 }
 0x1b6   :  { %v460_v43 = vpop.f32.mrf.mxu1 }
 0x1b8   :  { %v462_v44 = vpop.f32.mrf.mxu1 }
 0x1ba   :  { %v1322_v45 = vpop.f32.mrf.mxu1 }
 0x1bb   :  { %v733_v46 = vpop.f32.mrf.mxu0 }
 0x1bc   :  { %v1324_v47 = vpop.f32.mrf.mxu1 }
 0x1bd   :  { %v735_v48 = vpop.f32.mrf.mxu0 }
 0x1be   :  { %v1326_v50 = vpop.f32.mrf.mxu1 }
 0x1bf   :  { %v739_v49 = vpop.f32.mrf.mxu0 }
 0x1c0   :  { %v1328_v52 = vpop.f32.mrf.mxu1 }
 0x1c1   :  { %v741_v53 = vpop.f32.mrf.mxu0 }
 0x1c2   :  { %v1330_v54 = vpop.f32.mrf.mxu1 }
 0x1c3   :  { %v745_v56 = vpop.f32.mrf.mxu0 }
 0x1c4   :  { %v1332_v57 = vpop.f32.mrf.mxu1 }
 0x1c5   :  { %v747_v59 = vpop.f32.mrf.mxu0 }
 0x1c6   :  { %v1334_v58 = vpop.f32.mrf.mxu1 }
 0x1c7   :  { %v751_v1 = vpop.f32.mrf.mxu0 }
 0x1c8   :  { %v1336_v61 = vpop.f32.mrf.mxu1 }
 0x1c9   :  { %v753_v9 = vpop.f32.mrf.mxu0 }
 0x1ca   :  { %v579_v0 = vpop.f32.mrf.mxu1 }
 0x1cb   :  { %v580_v2 = vadd.f32 %v579_v0, %v442_v37 }
 0x1cc   :  { %v581_v4 = vpop.f32.mrf.mxu1  ;;  %v757_v18 = vpop.f32.mrf.mxu0 }
 0x1cd   :  { %v780_v5 = vadd.f32 %v733_v46, %v580_v2  ;;  %v582_v6 = vadd.f32 %v581_v4, %v444_v38 }
 0x1ce   :  { %v585_v8 = vpop.f32.mrf.mxu1  ;;  %v759_v27 = vpop.f32.mrf.mxu0 }
 0x1cf   :  { %v808_v10 = vadd.f32 %v1341_v3, %v780_v5  ;;  %v781_v11 = vadd.f32 %v735_v48, %v582_v6  ;;  %v586_v12 = vadd.f32 %v585_v8, %v448_v39 }
 0x1d0   :  { %v587_v13 = vpop.f32.mrf.mxu1  ;;  %v763_v36 = vpop.f32.mrf.mxu0 }
 0x1d1   :  { %824 = vst [vmem:[#allocation5] sm:$0xff] %v808_v10  ;;  %v809_v14 = vadd.f32 %v1343_v7, %v781_v11  ;;  %v782_v15 = vadd.f32 %v739_v49, %v586_v12  ;;  %v588_v16 = vadd.f32 %v587_v13, %v450_v40 }
 0x1d2   :  { %v591_v17 = vpop.f32.mrf.mxu1  ;;  %v765_v48 = vpop.f32.mrf.mxu0 }
 0x1d3   :  { %825 = vst [vmem:[#allocation5 + $0x8] sm:$0xff] %v809_v14  ;;  %v810_v19 = vadd.f32 %v1341_v3, %v782_v15  ;;  %v783_v20 = vadd.f32 %v741_v53, %v588_v16  ;;  %v592_v21 = vadd.f32 %v591_v17, %v454_v41 }
 0x1d4   :  { %v593_v22 = vpop.f32.mrf.mxu1  ;;  %v769_v55 = vpop.f32.mrf.mxu0 }
 0x1d5   :  { %826 = vst [vmem:[#allocation5 + $0x10] sm:$0xff] %v810_v19  ;;  %v811_v23 = vadd.f32 %v1343_v7, %v783_v20  ;;  %v784_v24 = vadd.f32 %v745_v56, %v592_v21  ;;  %v594_v25 = vadd.f32 %v593_v22, %v456_v42 }
 0x1d6   :  { %v597_v26 = vpop.f32.mrf.mxu1 }
 0x1d7   :  { %827 = vst [vmem:[#allocation5 + $0x18] sm:$0xff] %v811_v23  ;;  %v812_v28 = vadd.f32 %v1341_v3, %v784_v24  ;;  %v785_v29 = vadd.f32 %v747_v59, %v594_v25  ;;  %v598_v30 = vadd.f32 %v597_v26, %v460_v43 }
 0x1d8   :  { %v599_v31 = vpop.f32.mrf.mxu1 }
 0x1d9   :  { %828 = vst [vmem:[#allocation5 + $0x20] sm:$0xff] %v812_v28  ;;  %v813_v32 = vadd.f32 %v1343_v7, %v785_v29  ;;  %v786_v33 = vadd.f32 %v751_v1, %v598_v30  ;;  %v600_v34 = vadd.f32 %v599_v31, %v462_v44  ;;  %v771_v1 = vpop.f32.mrf.mxu0 }
 0x1da   :  { %v603_v35 = vpop.f32.mrf.mxu1 }
 0x1db   :  { %829 = vst [vmem:[#allocation5 + $0x28] sm:$0xff] %v813_v32  ;;  %v814_v37 = vadd.f32 %v1341_v3, %v786_v33  ;;  %v787_v38 = vadd.f32 %v753_v9, %v600_v34  ;;  %v604_v39 = vadd.f32 %v603_v35, %v1322_v45 }
 0x1dc   :  { %v605_v40 = vpop.f32.mrf.mxu1 }
 0x1dd   :  { %830 = vst [vmem:[#allocation5 + $0x30] sm:$0xff] %v814_v37  ;;  %v815_v41 = vadd.f32 %v1343_v7, %v787_v38  ;;  %v788_v42 = vadd.f32 %v757_v18, %v604_v39  ;;  %v606_v43 = vadd.f32 %v605_v40, %v1324_v47 }
 0x1de   :  { %v609_v46 = vpop.f32.mrf.mxu1 }
 0x1df   :  { %831 = vst [vmem:[#allocation5 + $0x38] sm:$0xff] %v815_v41  ;;  %v816_v44 = vadd.f32 %v1341_v3, %v788_v42  ;;  %v789_v51 = vadd.f32 %v759_v27, %v606_v43  ;;  %v610_v49 = vadd.f32 %v609_v46, %v1326_v50 }
 0x1e0   :  { %v611_v53 = vpop.f32.mrf.mxu1 }
 0x1e1   :  { %832 = vst [vmem:[#allocation5 + $0x40] sm:$0xff] %v816_v44  ;;  %v817_v45 = vadd.f32 %v1343_v7, %v789_v51  ;;  %v790_v56 = vadd.f32 %v763_v36, %v610_v49  ;;  %v612_v59 = vadd.f32 %v611_v53, %v1328_v52 }
 0x1e2   :  { %v615_v60 = vpop.f32.mrf.mxu1 }
 0x1e3   :  { %833 = vst [vmem:[#allocation5 + $0x48] sm:$0xff] %v817_v45  ;;  %v818_v47 = vadd.f32 %v1341_v3, %v790_v56  ;;  %v791_v62 = vadd.f32 %v765_v48, %v612_v59  ;;  %v616_v63 = vadd.f32 %v615_v60, %v1330_v54 }
 0x1e4   :  { %v617_v0 = vpop.f32.mrf.mxu1 }
 0x1e5   :  { %834 = vst [vmem:[#allocation5 + $0x50] sm:$0xff] %v818_v47  ;;  %v819_v50 = vadd.f32 %v1343_v7, %v791_v62  ;;  %v618_v2 = vadd.f32 %v617_v0, %v1332_v57  ;;  %v792_v4 = vadd.f32 %v769_v55, %v616_v63 }
 0x1e6   :  { %v621_v5 = vpop.f32.mrf.mxu1 }
 0x1e7   :  { %835 = vst [vmem:[#allocation5 + $0x58] sm:$0xff] %v819_v50  ;;  %v820_v6 = vadd.f32 %v1341_v3, %v792_v4  ;;  %v793_v52 = vadd.f32 %v771_v1, %v618_v2  ;;  %v622_v9 = vadd.f32 %v621_v5, %v1334_v58 }
 0x1e8   :  { %v623_v8 = vpop.f32.mrf.mxu1 }
 0x1e9   :  { %836 = vst [vmem:[#allocation5 + $0x60] sm:$0xff] %v820_v6  ;;  %v821_v10 = vadd.f32 %v1343_v7, %v793_v52  ;;  %v624_v11 = vadd.f32 %v623_v8, %v1336_v61 }
 0x1ea   :  { %v775_v54 = vpop.f32.mrf.mxu1 }
 0x1eb   :  { %837 = vst [vmem:[#allocation5 + $0x68] sm:$0xff] %v821_v10  ;;  %v794_v12 = vadd.f32 %v775_v54, %v622_v9 }
 0x1ec   :  { %v777_v13 = vpop.f32.mrf.mxu1 }
 0x1ed   :  { %v822_v57 = vadd.f32 %v1341_v3, %v794_v12  ;;  %v795_v14 = vadd.f32 %v777_v13, %v624_v11 }
 0x1ef   :  { %838 = vst [vmem:[#allocation5 + $0x70] sm:$0xff] %v822_v57  ;;  %v823_v15 = vadd.f32 %v1343_v7, %v795_v14 }
 0x1f1   :  { %839 = vst [vmem:[#allocation5 + $0x78] sm:$0xff] %v823_v15 }
 0x1f2   :  { %1029 = shalt.err (!%p1026_p9)
}
 0x1f3   :  { %851 = dma.vmem_to_hbm [thread:$0]  %s846_s27, 2048, %s1379_s4, [#allocation4], %s1043_s18, %s1043_s18, %s1044_s19  }
 0x1f4   :  { %1040 = dma.done.wait [#allocation4], 2048  }
 0x1f5   :  { %1041 = vsyncadd [#allocation4], 4294965248 }
 0x1f6   :  { %855 = vsyncpa [#allocation3], 1 }
 0x1f7   :  { %856 = vsyncpa [#allocation4], 1 }

</bundles_post_ra>
